<compile_context>
chip_gen: v6e
topology: v6e:2x2x1
jax: 0.10.0
libtpu: 0.0.40
codegen_flags: <defaults>
</compile_context>

<pallas_src>
import functools
import math

import jax
import jax.numpy as jnp
from jax import lax
from jax.experimental import pallas as pl
from jax.experimental.pallas import tpu as pltpu

_VMEM_LIMIT_BYTES = 32 * 1024 * 1024  # explicit scoped-VMEM limit (safe on v5e/v6e/v7x)


def _round_up(x: int, m: int) -> int:
    return (x + m - 1) // m * m


# --------------------------------------------------------------------------
# Kernel 1: fused QKV projection.  One (blk, d_in) x (d_in, 3*d_out_p) matmul
# per (batch, seq-tile); outputs are lane-dense compute_dtype slabs.
# --------------------------------------------------------------------------
def _qkv_proj_kernel(x_ref, w_ref, q_ref, kv_ref, *, d_out_p: int):
    p = jnp.dot(x_ref[...], w_ref[...], preferred_element_type=jnp.float32)
    q_ref[...] = p[:, :d_out_p].astype(q_ref.dtype)        # scaled Q
    kv_ref[...] = p[:, d_out_p:].astype(kv_ref.dtype)      # [K | V]


# --------------------------------------------------------------------------
# Kernel 2: flash-style causal attention over precomputed Q / [K|V] tiles.
# grid = (batch, flat lower-triangular step); online-softmax state in VMEM.
# --------------------------------------------------------------------------
def _flash_causal_kernel(seed_ref, qi_map_ref, kv_map_ref,
                         q_ref, kv_ref, o_ref,
                         m_sc, l_sc, acc_sc,
                         *, dropout_p: float, d_out_p: int,
                         compute_dtype, approx_recip: bool):
    # All grid/program queries at top level (required for clean lowering).
    b = pl.program_id(0)
    s_idx = pl.program_id(1)
    n_steps = pl.num_programs(1)
    qi = qi_map_ref[s_idx]          # q-tile index for this step
    kv = kv_map_ref[s_idx]          # kv-tile index for this step (kv <= qi)

    @pl.when(kv == 0)
    def _init():
        m_sc[...] = jnp.full_like(m_sc, -jnp.inf)
        l_sc[...] = jnp.zeros_like(l_sc)
        acc_sc[...] = jnp.zeros_like(acc_sc)

    def _update(apply_mask: bool):
        k = kv_ref[:, :d_out_p]
        v = kv_ref[:, d_out_p:]
        # scores = q @ k^T : contract last axis of both (no explicit transpose).
        s = lax.dot_general(q_ref[...], k, (((1,), (1,)), ((), ())),
                            preferred_element_type=jnp.float32)     # (blk, blk)
        if apply_mask:
            # Only the diagonal tile needs masking; local indices suffice
            # because qi == kv here (global col > global row <=> c > r).
            row = lax.broadcasted_iota(jnp.int32, s.shape, 0)
            col = lax.broadcasted_iota(jnp.int32, s.shape, 1)
            s = jnp.where(col > row, -jnp.inf, s)

        m_prev = m_sc[...]
        m_new = jnp.maximum(m_prev, jnp.max(s, axis=-1, keepdims=True))
        alpha = jnp.exp(m_prev - m_new)
        p = jnp.exp(s - m_new)                                       # unnormalized
        l_sc[...] = alpha * l_sc[...] + jnp.sum(p, axis=-1, keepdims=True)
        m_sc[...] = m_new

        if dropout_p > 0.0:
            # nn.Dropout on attention weights: normalization (1/l) is a per-row
            # scalar applied at the end, so dropping the unnormalized p here is
            # exactly dropout(softmax(s)) @ v.  Hash the per-tile counter so
            # sequential tiles do not get correlated PRNG streams.
            tile = b * n_steps + s_idx
            pltpu.prng_seed(seed_ref[0] + tile * 1664525 + 1013904223)
            bits = pltpu.bitcast(pltpu.prng_random_bits(s.shape), jnp.uint32)
            thresh = jnp.uint32(min(int(round(dropout_p * 4294967296.0)),
                                    4294967295))
            keep = bits >= thresh       # P(keep) = 1 - dropout_p, integer domain
            p = jnp.where(keep, p * jnp.float32(1.0 / (1.0 - dropout_p)), 0.0)

        acc_sc[...] = alpha * acc_sc[...] + jnp.dot(
            p.astype(compute_dtype), v, preferred_element_type=jnp.float32)

    @pl.when(kv < qi)
    def _off_diag():                    # strictly-lower tile: never masked
        _update(apply_mask=False)

    @pl.when(kv == qi)
    def _diag_and_finalize():           # diagonal tile: mask + finalize
        _update(apply_mask=True)
        if approx_recip:
            inv_l = pl.reciprocal(l_sc[...], approx=True)     # EUP slot
            o_ref[...] = (acc_sc[...] * inv_l).astype(o_ref.dtype)
        else:
            # Exact normalization on the f32 path (no approximation).
            o_ref[...] = (acc_sc[...] / l_sc[...]).astype(o_ref.dtype)


# --------------------------------------------------------------------------
# Wrapper: CausalAttention.forward
# --------------------------------------------------------------------------
def causal_attention(x, w_query, w_key, w_value, *, dropout_p=0.0, seed=0,
                     block=256, compute_dtype=jnp.bfloat16):
    """x: (B, T, d_in) float32; w_*: nn.Linear weights (d_out, d_in), bias=False."""
    if not (0.0 <= float(dropout_p) < 1.0):
        raise ValueError("dropout_p must satisfy 0 <= p < 1")

    x = jnp.asarray(x, jnp.float32)
    B, T, d_in = x.shape
    d_out = w_query.shape[0]

    # Lane-dense head dim (Q/K/V and output last dim -> multiple of 128).
    d_out_p = _round_up(d_out, 128)

    # Sequence tile: at most `block`, sublane-aligned; pad T so tiles divide it.
    blk = min(block, _round_up(T, 8))
    t_p = _round_up(T, blk)
    if t_p != T:
        # Padded key rows are always masked by causality on the diagonal tile
        # (their column index > every real row); padded query rows are sliced off.
        x = jnp.pad(x, ((0, 0), (0, t_p - T), (0, 0)))

    # nn.Linear computes x @ W.T; fold 1/sqrt(d_k) (true d_out) into W_query.
    scale = 1.0 / math.sqrt(d_out)
    wq = (jnp.asarray(w_query, jnp.float32) * scale).T
    wk = jnp.asarray(w_key, jnp.float32).T
    wv = jnp.asarray(w_value, jnp.float32).T

    def pad_cols(w):
        return jnp.pad(w, ((0, 0), (0, d_out_p - d_out)))

    w_fused = jnp.concatenate(
        [pad_cols(wq), pad_cols(wk), pad_cols(wv)], axis=1).astype(compute_dtype)

    # Pre-cast x so the projection kernel streams compute_dtype, not f32.
    x_c = x.astype(compute_dtype)

    n_q = t_p // blk

    # ---- 1) Fused QKV projection (one matmul per (b, seq-tile)). ----
    # NOTE: w_fused has a constant index map; for very large d_in add
    # pipeline_mode=pl.Buffered(1) to its spec to save the 2nd pipeline buffer.
    q_all, kv_all = pl.pallas_call(
        functools.partial(_qkv_proj_kernel, d_out_p=d_out_p),
        out_shape=(jax.ShapeDtypeStruct((B, t_p, d_out_p), compute_dtype),
                   jax.ShapeDtypeStruct((B, t_p, 2 * d_out_p), compute_dtype)),
        grid=(B, n_q),
        in_specs=[
            pl.BlockSpec((None, blk, d_in), lambda b, t: (b, t, 0)),
            pl.BlockSpec((d_in, 3 * d_out_p), lambda b, t: (0, 0)),
        ],
        out_specs=(
            pl.BlockSpec((None, blk, d_out_p), lambda b, t: (b, t, 0)),
            pl.BlockSpec((None, blk, 2 * d_out_p), lambda b, t: (b, t, 0)),
        ),
        compiler_params=pltpu.CompilerParams(
            dimension_semantics=("parallel", "parallel"),
            vmem_limit_bytes=_VMEM_LIMIT_BYTES),
    )(x_c, w_fused)

    # ---- 2) Flash attention over a flattened lower-triangular grid. ----
    pairs = [(qi, kv) for qi in range(n_q) for kv in range(qi + 1)]
    n_steps = len(pairs)
    qi_map = jnp.array([p[0] for p in pairs], dtype=jnp.int32)
    kv_map = jnp.array([p[1] for p in pairs], dtype=jnp.int32)
    seed_arr = jnp.array([seed], dtype=jnp.int32)

    kernel = functools.partial(
        _flash_causal_kernel,
        dropout_p=float(dropout_p), d_out_p=d_out_p,
        compute_dtype=compute_dtype,
        approx_recip=(compute_dtype != jnp.float32))

    grid_spec = pltpu.PrefetchScalarGridSpec(
        num_scalar_prefetch=3,                     # seed, qi_map, kv_map
        grid=(B, n_steps),
        in_specs=[
            pl.BlockSpec((None, blk, d_out_p),
                         lambda b, s, seed, qim, kvm: (b, qim[s], 0)),
            pl.BlockSpec((None, blk, 2 * d_out_p),
                         lambda b, s, seed, qim, kvm: (b, kvm[s], 0)),
        ],
        out_specs=pl.BlockSpec((None, blk, d_out_p),
                               lambda b, s, seed, qim, kvm: (b, qim[s], 0)),
        scratch_shapes=[
            pltpu.VMEM((blk, 1), jnp.float32),          # running max m
            pltpu.VMEM((blk, 1), jnp.float32),          # running denom l
            pltpu.VMEM((blk, d_out_p), jnp.float32),    # unnormalized acc
        ],
    )

    out = pl.pallas_call(
        kernel,
        out_shape=jax.ShapeDtypeStruct((B, t_p, d_out_p), jnp.float32),
        grid_spec=grid_spec,
        compiler_params=pltpu.CompilerParams(
            dimension_semantics=("parallel", "arbitrary"),
            vmem_limit_bytes=_VMEM_LIMIT_BYTES),
    )(seed_arr, qi_map, kv_map, q_all, kv_all)

    return out[:, :T, :d_out]


def _reference(x, w_query, w_key, w_value):
    """Pure-JAX reference of CausalAttention.forward (dropout disabled / eval mode)."""
    q = jnp.einsum("btd,od->bto", x, w_query)
    k = jnp.einsum("btd,od->bto", x, w_key)
    v = jnp.einsum("btd,od->bto", x, w_value)
    scores = jnp.einsum("bto,bso->bts", q, k)
    t = x.shape[1]
    mask = jnp.triu(jnp.ones((t, t), dtype=bool), k=1)
    scores = jnp.where(mask[None], -jnp.inf, scores)
    w = jax.nn.softmax(scores / math.sqrt(q.shape[-1]), axis=-1)
    return jnp.einsum("bts,bso->bto", w, v)


if __name__ == "__main__":
    # ---- 1) The chapter's demo: batch of 2 copies of the (6, 3) inputs. ----
    inputs = jnp.array(
        [[0.43, 0.15, 0.89],
         [0.55, 0.87, 0.66],
         [0.57, 0.85, 0.64],
         [0.22, 0.58, 0.33],
         [0.77, 0.25, 0.10],
         [0.05, 0.80, 0.55]], dtype=jnp.float32)
    batch = jnp.stack((inputs, inputs), axis=0)          # (2, 6, 3)

    d_in, d_out = 3, 2
    key = jax.random.PRNGKey(0)
    kq, kk, kv_ = jax.random.split(key, 3)
    bound = 1.0 / math.sqrt(d_in)
    w_query = jax.random.uniform(kq, (d_out, d_in), jnp.float32, -bound, bound)
    w_key = jax.random.uniform(kk, (d_out, d_in), jnp.float32, -bound, bound)
    w_value = jax.random.uniform(kv_, (d_out, d_in), jnp.float32, -bound, bound)

    ref_small = _reference(batch, w_query, w_key, w_value)

    # f32 compute path (exact softmax normalization, no approx reciprocal).
    out_f32 = jax.block_until_ready(
        causal_attention(batch, w_query, w_key, w_value,
                         dropout_p=0.0, compute_dtype=jnp.float32))
    assert out_f32.shape == (2, 6, d_out)
    assert jnp.allclose(out_f32, ref_small, atol=5e-3, rtol=5e-3)

    # Default bf16 MXU path (f32 accumulation, EUP reciprocal).
    out_bf16 = jax.block_until_ready(
        causal_attention(batch, w_query, w_key, w_value, dropout_p=0.0))
    assert out_bf16.shape == (2, 6, d_out)
    assert jnp.allclose(out_bf16, ref_small, atol=3e-2, rtol=3e-2)

    # ---- 2) Larger case: multi-tile triangular grid + seq padding (T=200). ----
    B2, T2, d_in2, d_out2 = 2, 200, 16, 64
    k1, k2, k3, k4 = jax.random.split(jax.random.PRNGKey(1), 4)
    x2 = jax.random.uniform(k1, (B2, T2, d_in2), jnp.float32, -1.0, 1.0)
    b2 = 1.0 / math.sqrt(d_in2)
    wq2 = jax.random.uniform(k2, (d_out2, d_in2), jnp.float32, -b2, b2)
    wk2 = jax.random.uniform(k3, (d_out2, d_in2), jnp.float32, -b2, b2)
    wv2 = jax.random.uniform(k4, (d_out2, d_in2), jnp.float32, -b2, b2)

    out_big = jax.block_until_ready(
        causal_attention(x2, wq2, wk2, wv2, dropout_p=0.0,
                         compute_dtype=jnp.float32, block=128))
    ref_big = _reference(x2, wq2, wk2, wv2)
    assert out_big.shape == (B2, T2, d_out2)
    assert jnp.allclose(out_big, ref_big, atol=1e-2, rtol=1e-2)

    # NOTE: training-mode dropout (nn.Dropout on attention weights) is
    # implemented in the kernel via the TPU HW PRNG (pltpu.prng_*); it is not
    # exercised here because those primitives only lower on real TPU hardware.

    print("KERNEL_OK")
</pallas_src>

<mosaic_0001>
module attributes {stable_mosaic.version = 11 : i64} {
  func.func @_qkv_proj_kernel(%arg0: i32, %arg1: i32, %arg2: memref<1x8x3xf32, #tpu.memory_space<vmem>>, %arg3: memref<3x384xf32, #tpu.memory_space<vmem>>, %arg4: memref<1x8x128xf32, #tpu.memory_space<vmem>>, %arg5: memref<1x8x256xf32, #tpu.memory_space<vmem>>) attributes {dimension_semantics = [#tpu.dimension_semantics<parallel>, #tpu.dimension_semantics<parallel>], iteration_bounds = array<i64: 2, 1>, scalar_prefetch = 0 : i64, scratch_operands = 0 : i64, tpu.core_type = #tpu.core_type<tc>, window_params = [{transform_indices = @transform_0, window_bounds = array<i64: 1, 8, 3>}, {pipeline_mode = #tpu.pipeline_mode<synchronous>, transform_indices = @transform_1, window_bounds = array<i64: 3, 384>}, {transform_indices = @transform_2, window_bounds = array<i64: 1, 8, 128>}, {transform_indices = @transform_3, window_bounds = array<i64: 1, 8, 256>}]} {
    %c0 = arith.constant 0 : index
    %c0_0 = arith.constant 0 : index
    %c0_1 = arith.constant 0 : index
    %0 = vector.load %arg2[%c0, %c0_0, %c0_1] : memref<1x8x3xf32, #tpu.memory_space<vmem>>, vector<1x8x3xf32>
    %1 = vector.shape_cast %0 : vector<1x8x3xf32> to vector<8x3xf32>
    %c0_2 = arith.constant 0 : index
    %c0_3 = arith.constant 0 : index
    %2 = vector.load %arg3[%c0_2, %c0_3] : memref<3x384xf32, #tpu.memory_space<vmem>>, vector<3x384xf32>
    %cst = arith.constant dense<0.000000e+00> : vector<8x384xf32>
    %3 = tpu.matmul %1, %2, %cst {dimension_numbers = #tpu.dot_dimension_numbers<[1], [0], [0], [1], [0, 0, 1, 1], [], []>} : vector<8x3xf32>, vector<3x384xf32>, vector<8x384xf32> -> vector<8x384xf32>
    %4 = vector.extract_strided_slice %3 {offsets = [0, 0], sizes = [8, 128], strides = [1, 1]} : vector<8x384xf32> to vector<8x128xf32>
    %c0_4 = arith.constant 0 : index
    %c0_5 = arith.constant 0 : index
    %c0_6 = arith.constant 0 : index
    %5 = vector.load %arg4[%c0_4, %c0_5, %c0_6] : memref<1x8x128xf32, #tpu.memory_space<vmem>>, vector<1x8x128xf32>
    %6 = vector.shape_cast %5 : vector<1x8x128xf32> to vector<8x128xf32>
    %7 = vector.shape_cast %4 : vector<8x128xf32> to vector<1x8x128xf32>
    tpu.vector_store %arg4[%c0_4, %c0_5, %c0_6], %7 {strides = array<i32>} : memref<1x8x128xf32, #tpu.memory_space<vmem>>, vector<1x8x128xf32>,
    %8 = vector.extract_strided_slice %3 {offsets = [0, 128], sizes = [8, 256], strides = [1, 1]} : vector<8x384xf32> to vector<8x256xf32>
    %c0_7 = arith.constant 0 : index
    %c0_8 = arith.constant 0 : index
    %c0_9 = arith.constant 0 : index
    %9 = vector.load %arg5[%c0_7, %c0_8, %c0_9] : memref<1x8x256xf32, #tpu.memory_space<vmem>>, vector<1x8x256xf32>
    %10 = vector.shape_cast %9 : vector<1x8x256xf32> to vector<8x256xf32>
    %11 = vector.shape_cast %8 : vector<8x256xf32> to vector<1x8x256xf32>
    tpu.vector_store %arg5[%c0_7, %c0_8, %c0_9], %11 {strides = array<i32>} : memref<1x8x256xf32, #tpu.memory_space<vmem>>, vector<1x8x256xf32>,
    return
  }
  func.func @transform_0(%arg0: i32, %arg1: i32) -> (i32, i32, i32) {
    %c0_i32 = arith.constant 0 : i32
    %c0_i32_0 = arith.constant 0 : i32
    return %arg0, %arg1, %c0_i32 : i32, i32, i32
  }
  func.func @transform_1(%arg0: i32, %arg1: i32) -> (i32, i32) {
    %c0_i32 = arith.constant 0 : i32
    %c0_i32_0 = arith.constant 0 : i32
    %c0_i32_1 = arith.constant 0 : i32
    return %c0_i32, %c0_i32_0 : i32, i32
  }
  func.func @transform_2(%arg0: i32, %arg1: i32) -> (i32, i32, i32) {
    %c0_i32 = arith.constant 0 : i32
    %c0_i32_0 = arith.constant 0 : i32
    return %arg0, %arg1, %c0_i32 : i32, i32, i32
  }
  func.func @transform_3(%arg0: i32, %arg1: i32) -> (i32, i32, i32) {
    %c0_i32 = arith.constant 0 : i32
    %c0_i32_0 = arith.constant 0 : i32
    return %arg0, %arg1, %c0_i32 : i32, i32, i32
  }
}

</mosaic_0001>

<bundles_post_ra>
// kernel: tpu_custom_call.1
= control target key start
LH: loop header
LB: loop body
LE: loop exit
PB: predicated region body
PF: predicated region fallthrough
CT: control target
= control target key end

     0   :  { %9 = vsyncpa [#allocation3], 0  ;;  %s886_s0 = inlined_call_operand.vmem [shape: f32[2,8,3], index: 0, kind: input, shape index: {}]   ;;  %s887_s1 = inlined_call_operand.vmem [shape: f32[3,384], index: 1, kind: input, shape index: {}]   ;;  %s888_s2 = inlined_call_operand.hbm [shape: f32[2,8,128], index: 2, kind: output, shape index: {0}]   ;;  %s889_s3 = inlined_call_operand.hbm [shape: f32[2,8,256], index: 3, kind: output, shape index: {1}]  }
   0x1   :  { %11 = vsyncpa [#allocation3 + $0x1], 0 }
   0x2   :  { %12 = vsyncpa [#allocation5], 0 }
   0x3   :  { %14 = vsyncpa [#allocation5 + $0x1], 0  ;;  %s730_s12 = smov 0   ;;  %s732_s13 = smov 0  }
   0x4   :  { %s734_s14 = smov 0   ;;  %s736_s15 = smov 0  }
   0x5   :  { %s738_s16 = smov 0   ;;  %s740_s17 = smov 0  }
   0x6 LB: > { %s507_s18 = sadd.s32 4294967295, %s704_s17   ;;  %s508_s19 = sadd.s32 4294967294, %s704_s17   ;;  %s704_s17 = sphi %s740_s17, %s20_s17   ;;  %s700_s16 = sphi %s738_s16, %s896_s16   ;;  %s696_s15 = sphi %s736_s15, %s895_s15   ;;  %s692_s14 = sphi %s734_s14, %s894_s14   ;;  %s688_s13 = sphi %s732_s13, %s893_s13   ;;  %s684_s12 = sphi %s730_s12, %s892_s12  }
   0x7   : > { %s32_s20 = sadd.s32 1, %s700_s16  ;;  %s90_s21 = sadd.s32 1, %s692_s14 }
   0x8   : > { %p34_p0 = scmp.ge.s32.totalorder %s32_s20, 2  ;;  %p100_p1 = scmp.ne.s32.totalorder %s692_s14, %s688_s13 }
   0x9   : > { %p101_p2 = scmp.eq.s32.totalorder %s507_s18, 1  ;;  %p106_p3 = scmp.ne.s32.totalorder %s688_s13, %s684_s12 }
   0xa   : > { %s898_s20 = smov (%p34_p0, %s32_s20), 0  ;;  %p107_p5 = scmp.eq.s32.totalorder %s508_s19, 1 }
   0xb   : > { %p770_p4 = por %p101_p2, %p100_p1  ;;  %s85_s23 = ssub.s32 %s700_s16, %s898_s20 }
   0xc   : > { %p511_p6 = scmp.ge.s32.totalorder %s704_s17, 1  ;;  %p88_p7 = scmp.eq.s32.totalorder %s85_s23, 0 }
   0xd   : > { %p777_p8 = por %p107_p5, %p106_p3  ;;  %p166_p9 = scmp.lt.s32.totalorder %s704_s17, 3 }
   0xe   : > { %s783_s25 = scalar_select %p88_p7, %s692_s14, %s90_s21  }
   0xf   : > { %p167_p10 = pnand %p511_p6, %p166_p9 }
  0x10   : > { %p197_p11 = scmp.lt.s32.totalorder (!%p167_p10), %s696_s15, 1  ;;  %s797_s8 = sand.u32 (!%p167_p10), 1, %s688_s13  }
  0x11   : > { %170 = sbr.rel (%p167_p10) target bundleno = 257 (0x101), region = 28  ;;  %s512_s9 = sshll.u32 (!%p167_p10), %s797_s8, 3 }
  0x12   : > { %s513_s10 = sshll.u32 (!%p167_p10), %s797_s8, 4  ;;  %s189_s11 = scalar_lea.vmem (!%p167_p10), [#allocation2], %s512_s9 }
  0x13   : > { %s385_s18 = sshll.u32 (!%p167_p10), %s189_s11, 4  ;;  %s522_s19 = sshll.u32 (!%p167_p10), %s696_s15, 7  ;;  %s805_s18 = int_to_ptr.vmem [resolvable:$true] %s385_s18 }
  0x14   : > { %s802_s21 = scalar_lea.vmem (!%p167_p10), [#allocation4], %s513_s10  ;;  %s527_s26 = sshll.u32 (!%p167_p10), %s696_s15, 8 }
  0x15   : > { %s401_s23 = sshll.u32 (!%p167_p10), %s802_s21, 4  ;;  %s811_s29 = scalar_lea.hbm (!%p167_p10), %s888_s2, %s522_s19  ;;  %s813_s23 = int_to_ptr.vmem [resolvable:$true] %s401_s23 }
  0x16   : > { %v205_v0 = vld [vmem:[%s887_s1] sm:$0x77]  ;;  %vm214_vm0 = vcmask 1042432   ;;  %v206_v1 = vld [vmem:[%s887_s1 + $0x8] sm:$0x7]  ;;  %v706_v3 = vmov 0.0   ;;  %s819_s5 = scalar_lea.hbm %s889_s3, %s527_s26 }
  0x17   : > { %v209_v2 = vcombine.high %v205_v0, %v205_v0  ;;  %530 = vmatprep.subr.mxu1 %v706_v3  ;;  %285 = vmatprep.mubr.f32.mxu0 %v706_v3  ;;  %vm707_vm1 = vmmov 0   ;;  %s198_s30 = scalar_select %p197_p11, %s696_s15, 1  ;;  %vm210_vm2 = vcmask 23552  }
  0x18   : > { %531 = vmatpush3.msk.msra.mxu1 %vm214_vm0, %v206_v1  ;;  %532 = vmatprep.mubr.msk.f32.mxu1 %vm707_vm1, %v706_v3  ;;  %s366_s15 = scalar_lea.sflag [#allocation3], %s797_s8  ;;  %s598_s6 = scalar_lea.vmem %s805_s18, 128 }
  0x19   : > { %515 = vmatprep.subr.msk.mxu0 %vm214_vm0, %v209_v2  ;;  %s514_s4 = sshll.u32 %s198_s30, 3  ;;  %p599_p12 = scmp.ne.s32.totalorder %s805_s18, %s598_s6 }
  0x1a   : > { %516 = vmatpush1.msk.msra.mxu0 %vm214_vm0, %v205_v0  ;;  %s203_s7 = scalar_lea.vmem %s886_s0, %s514_s4 }
  0x1b   : > { %v204_v4 = vld [vmem:[%s203_s7] sm:$0xff]  ;;  %p600_p13 = pnand %p599_p12, %p770_p4  ;;  %s708_s7 = smov [#allocation2]  }
  0x1c   : > { %517 = vmatmul.mubr.msk.f32.vlgmr.msra.gmra.mxu0 %vm210_vm2, %v204_v4  ;;  %533 = vmatmul.mubr.msk.f32.vlgmr.msra.gmra.mxu1 %vm210_vm2, %v204_v4  ;;  %s602_s9 = sshll.u32 %s708_s7, 4  ;;  %s603_s9 = int_to_ptr.vmem [resolvable:$false] %s602_s9 }
  0x1d   : > { %p601_p0 = pneg %p600_p13  ;;  %s604_s10 = scalar_lea.vmem %s603_s9, 256 }
  0x1e   : > { %p605_p1 = scmp.lt.s32.totalorder %s805_s18, %s603_s9  ;;  %p606_p2 = scmp.lt.s32.totalorder %s604_s10, %s598_s6 }
  0x20   : > { %p607_p3 = por %p606_p2, %p605_p1 }
  0x22   : > { %p608_p5 = pnand %p607_p3, %p601_p0 }
  0xdc   : > { %v287_v5 = vpop.f32.mrf.mxu0  ;;  %v358_v6 = vpop.f32.mrf.mxu1 }
  0xdd   : > { %362 = vst [vmem:[%s189_s11] sm:$0xff] %v287_v5  ;;  %364 = vst [vmem:[%s802_s21 + $0x8] sm:$0xff] %v358_v6 }
  0xde   : > { %v289_v7 = vpop.f32.mrf.mxu0  ;;  %v534_v8 = vpop.f32.mrf.mxu1 }
  0xdf   : > { %611 = shalt.err (!%p608_p5)
}
  0xe0   : > { %s612_s11 = scalar_lea.hbm %s811_s29, 128  ;;  %s616_s27 = scalar_lea.hbm %s888_s2, 256 }
  0xe1   : > { %p613_p6 = scmp.ne.s32.totalorder %s811_s29, %s612_s11  ;;  %p617_p10 = scmp.lt.s32.totalorder %s811_s29, %s888_s2 }
  0xe2   : > { %p618_p11 = scmp.lt.s32.totalorder %s616_s27, %s612_s11 }
  0xe3   : > { %p614_p7 = pnand %p613_p6, %p770_p4 }
  0xe4   : > { %p619_p12 = por %p618_p11, %p617_p10 }
  0xe5   : > { %p615_p9 = pneg %p614_p7 }
  0xe7   : > { %p620_p13 = pnand %p619_p12, %p615_p9 }
  0xe9   : > { %623 = shalt.err (!%p620_p13)
}
  0xea   : > { %535 = dma.vmem_to_hbm [thread:$0]  (%p770_p4), %s805_s18, 128, %s811_s29, %s366_s15   ;;  %363 = vst [vmem:[%s802_s21] sm:$0xff] %v289_v7 }
  0xeb   : > { %s371_s4 = scalar_lea.sflag [#allocation5], %s797_s8  ;;  %s624_s6 = scalar_lea.vmem %s813_s23, 256 }
  0xec   : > { %p625_p0 = scmp.ne.s32.totalorder %s813_s23, %s624_s6  ;;  %s709_s7 = smov [#allocation4]  }
  0xed   : > { %s628_s9 = sshll.u32 %s709_s7, 4  ;;  %s629_s9 = int_to_ptr.vmem [resolvable:$false] %s628_s9 }
  0xee   : > { %p626_p1 = pnand %p625_p0, %p770_p4  ;;  %s630_s10 = scalar_lea.vmem %s629_s9, 512 }
  0xef   : > { %p631_p3 = scmp.lt.s32.totalorder %s813_s23, %s629_s9  ;;  %p632_p5 = scmp.lt.s32.totalorder %s630_s10, %s624_s6 }
  0xf0   : > { %p627_p2 = pneg %p626_p1 }
  0xf1   : > { %p633_p6 = por %p632_p5, %p631_p3 }
  0xf3   : > { %p634_p7 = pnand %p633_p6, %p627_p2 }
  0xf5   : > { %637 = shalt.err (!%p634_p7)
}
  0xf6   : > { %s638_s18 = scalar_lea.hbm %s819_s5, 256  ;;  %s642_s29 = scalar_lea.hbm %s889_s3, 512 }
  0xf7   : > { %p639_p9 = scmp.ne.s32.totalorder %s819_s5, %s638_s18  ;;  %p643_p12 = scmp.lt.s32.totalorder %s819_s5, %s889_s3 }
  0xf8   : > { %p644_p13 = scmp.lt.s32.totalorder %s642_s29, %s638_s18 }
  0xf9   : > { %p640_p10 = pnand %p639_p9, %p770_p4 }
  0xfa   : > { %p645_p0 = por %p644_p13, %p643_p12 }
  0xfb   : > { %p641_p11 = pneg %p640_p10 }
  0xfd   : > { %p646_p1 = pnand %p645_p0, %p641_p11 }
  0xff   : > { %649 = shalt.err (!%p646_p1)
}
 0x100   : > { %536 = dma.vmem_to_hbm [thread:$0]  (%p770_p4), %s813_s23, 256, %s819_s5, %s371_s4  }
 0x101 PF: > { %p546_p2 = scmp.ge.s32.totalorder %s704_s17, 2  ;;  %s413_s19 = sand.u32 1, %s684_s12  }
 0x102   : > { %s414_s26 = scalar_lea.sflag [#allocation3], %s413_s19 }
 0x103   : > { %p540_p3 = pnand %p546_p2, %p777_p8 }
 0x105   : > { %p541_p5 = pneg %p540_p3 }
 0x107   : > { %675 = dma.done.wait (%p541_p5), %s414_s26, 128  }
 0x108   : > { %677 = vsyncadd (%p541_p5), %s414_s26, 4294967168  ;;  %s423_s27 = scalar_lea.sflag [#allocation5], %s413_s19 }
 0x109   : > { %679 = dma.done.wait (%p541_p5), %s423_s27, 256  }
 0x10a   : > { %681 = vsyncadd (%p541_p5), %s423_s27, 4294967040  ;;  %s20_s17 = sadd.s32 1, %s704_s17   ;;  %s892_s12 = smov %s688_s13 }
 0x10b   : > { %p17_p6 = scmp.ge.s32.totalorder %s20_s17, 4   ;;  %s893_s13 = smov %s692_s14 }
 0x10c   : > { %s894_s14 = smov %s783_s25  ;;  %s895_s15 = smov %s700_s16 }
 0x10d   : > { %s896_s16 = smov %s898_s20  ;;  %19 = sbr.rel (!%p17_p6) target bundleno = 6 (0x6), region = 80 }
 0x112   :  { %428 = vsyncpa [#allocation3], 1 }
 0x113   :  { %430 = vsyncpa [#allocation3 + $0x1], 1 }
 0x114   :  { %431 = vsyncpa [#allocation5], 1 }
 0x115   :  { %433 = vsyncpa [#allocation5 + $0x1], 1 }

</bundles_post_ra>
